<compile_context>
chip_gen: v6e
topology: v6e:2x2x1
jax: 0.10.0
libtpu: 0.0.40
codegen_flags: <defaults>
</compile_context>

<pallas_src>
import functools

import jax
import jax.numpy as jnp
import numpy as np
from jax.experimental import pallas as pl
from jax.experimental.pallas import tpu as pltpu


def _round_up(x: int, m: int) -> int:
    return ((x + m - 1) // m) * m


# ---------------------------------------------------------------------------
# Fused kernel: input projection + T-step recurrence + MLP head, per batch tile.
# ---------------------------------------------------------------------------
def _fused_forward_kernel(
    x_ref,        # [TB, I]  bf16
    w_ih_t_ref,   # [I, N]   bf16 (= W_ih^T)
    bias_in_ref,  # [1, N]   f32  (= b_ih + b_hh, folded at prep time)
    w_hh_t_ref,   # [N, N]   bf16 (= W_hh^T)
    alpha_ref,    # [1, N]   f32  (= 1 / tau)
    w1_t_ref,     # [N, Fp]  bf16 (= W1^T, lane-padded)
    b1_ref,       # [1, Fp]  f32  (lane-padded)
    w2_t_ref,     # [Fp, Cp] bf16 (= W2^T, lane-padded)
    b2_ref,       # [1, Cp]  f32  (lane-padded)
    pred_ref,     # [TB, Cp] f32
    hn_ref,       # [TB, N]  f32
    *,
    num_steps: int,
):
    # ---- prologue: static drive computed once (input is re-fed every step) ----
    drive = (
        jnp.dot(x_ref[...], w_ih_t_ref[...], preferred_element_type=jnp.float32)
        + bias_in_ref[...]
    )
    w_hh_t = w_hh_t_ref[...]
    # Hoist the [1,N] -> [TB,N] broadcast out of the unrolled loop (JAX does not
    # CSE broadcast_in_dim across unrolled iterations).
    alpha = jnp.broadcast_to(alpha_ref[...], drive.shape)

    # ---- recurrence: state lives in vregs; MXU fed bf16, state kept f32 ----
    def step(_, h):
        h_new = jax.nn.sigmoid(
            jnp.dot(h.astype(jnp.bfloat16), w_hh_t,
                    preferred_element_type=jnp.float32)
            + drive
        )
        # Leaky update rewritten to avoid the per-step (1 - alpha) rebroadcast.
        return h + alpha * (h_new - h)

    h0 = jnp.zeros(drive.shape, jnp.float32)
    h = jax.lax.fori_loop(0, num_steps, step, h0,
                          unroll=max(1, min(num_steps, 8)))
    hn_ref[...] = h

    # ---- fused classifier head: Linear -> ReLU -> (Dropout = id) -> Linear ----
    hid = jnp.maximum(
        jnp.dot(h.astype(jnp.bfloat16), w1_t_ref[...],
                preferred_element_type=jnp.float32)
        + b1_ref[...],
        0.0,
    )
    pred_ref[...] = (
        jnp.dot(hid.astype(jnp.bfloat16), w2_t_ref[...],
                preferred_element_type=jnp.float32)
        + b2_ref[...]
    )


# ---------------------------------------------------------------------------
# One-time (load-time) parameter prep: transpose, lane-pad, bf16 MXU feeds.
# Done once per model, NOT per forward call.
# ---------------------------------------------------------------------------
def prepare_params(params):
    N = params["w_hh"].shape[0]
    F = params["w1"].shape[0]
    C = params["w2"].shape[0]
    Fp = _round_up(F, 128)      # lane-pad fc_dim -> full-lane hid, K=128 head matmul
    Cp = _round_up(C, 128)      # lane-pad classes -> unmasked final store

    w1_t = jnp.zeros((N, Fp), jnp.bfloat16).at[:, :F].set(
        params["w1"].T.astype(jnp.bfloat16))
    b1 = jnp.zeros((1, Fp), jnp.float32).at[:, :F].set(
        params["b1"].reshape(1, F).astype(jnp.float32))
    w2_t = jnp.zeros((Fp, Cp), jnp.bfloat16).at[:F, :C].set(
        params["w2"].T.astype(jnp.bfloat16))
    b2 = jnp.zeros((1, Cp), jnp.float32).at[:, :C].set(
        params["b2"].reshape(1, C).astype(jnp.float32))

    return {
        "w_ih_t": params["w_ih"].T.astype(jnp.bfloat16),
        "bias_in": (params["b_ih"] + params["b_hh"]).reshape(1, N).astype(jnp.float32),
        "w_hh_t": params["w_hh"].T.astype(jnp.bfloat16),
        "alpha": (1.0 / params["tau"]).reshape(1, N).astype(jnp.float32),
        "w1_t": w1_t,
        "b1": b1,
        "w2_t": w2_t,
        "b2": b2,
    }


# ---------------------------------------------------------------------------
# Wrapper: pad batch, call fused kernel over a batch-parallel grid, slice pads.
# ---------------------------------------------------------------------------
@functools.partial(jax.jit, static_argnames=("num_steps", "num_classes"))
def spatially_embedded_classifier_forward(x_nchw, prep, num_steps, num_classes):
    """Returns (pred [B, num_classes], h_n [B, N])."""
    B = x_nchw.shape[0]
    x = x_nchw.reshape(B, -1).astype(jnp.bfloat16)   # Flatten(1) on NCHW
    I = x.shape[1]
    N = prep["w_hh_t"].shape[0]
    Fp = prep["w1_t"].shape[1]
    Cp = prep["w2_t"].shape[1]

    # Batch tile: >=256 MXU rows per matmul at real batch; at toy batch a single
    # sublane-padded block (grid=(1,)) so there is no extra grid-step overhead.
    TB = 256 if B >= 256 else _round_up(B, 8)
    Bp = _round_up(B, TB)
    x_p = jnp.zeros((Bp, I), jnp.bfloat16).at[:B].set(x)

    kernel = functools.partial(_fused_forward_kernel, num_steps=num_steps)

    pred_p, hn_p = pl.pallas_call(
        kernel,
        out_shape=(
            jax.ShapeDtypeStruct((Bp, Cp), jnp.float32),
            jax.ShapeDtypeStruct((Bp, N), jnp.float32),
        ),
        grid_spec=pltpu.PrefetchScalarGridSpec(
            num_scalar_prefetch=0,
            grid=(Bp // TB,),                             # batch-parallel grid axis
            in_specs=[
                pl.BlockSpec((TB, I), lambda b: (b, 0)),   # x (bf16)
                pl.BlockSpec((I, N), lambda b: (0, 0)),    # W_ih^T (bf16)
                pl.BlockSpec((1, N), lambda b: (0, 0)),    # b_ih + b_hh
                pl.BlockSpec((N, N), lambda b: (0, 0)),    # W_hh^T (bf16)
                pl.BlockSpec((1, N), lambda b: (0, 0)),    # alpha = 1/tau
                pl.BlockSpec((N, Fp), lambda b: (0, 0)),   # W1^T (bf16, padded)
                pl.BlockSpec((1, Fp), lambda b: (0, 0)),   # b1   (padded)
                pl.BlockSpec((Fp, Cp), lambda b: (0, 0)),  # W2^T (bf16, padded)
                pl.BlockSpec((1, Cp), lambda b: (0, 0)),   # b2   (padded)
            ],
            out_specs=(
                pl.BlockSpec((TB, Cp), lambda b: (b, 0)),  # pred (lane-dense)
                pl.BlockSpec((TB, N), lambda b: (b, 0)),   # h_n
            ),
        ),
        compiler_params=pltpu.CompilerParams(
            dimension_semantics=("parallel",),
            vmem_limit_bytes=64 * 1024 * 1024,
        ),
    )(
        x_p,
        prep["w_ih_t"], prep["bias_in"], prep["w_hh_t"], prep["alpha"],
        prep["w1_t"], prep["b1"], prep["w2_t"], prep["b2"],
    )
    return pred_p[:B, :num_classes], hn_p[:B]


# ---------------------------------------------------------------------------
# Pure-JAX f32 reference (mirrors the PyTorch semantics) for correctness check.
# ---------------------------------------------------------------------------
def reference_forward(x_nchw, params, num_steps):
    B = x_nchw.shape[0]
    x = x_nchw.reshape(B, -1).astype(jnp.float32)
    N = params["w_hh"].shape[0]
    alpha = 1.0 / params["tau"]
    x_proj = x @ params["w_ih"].T + params["b_ih"]
    h = jnp.zeros((B, N), jnp.float32)
    for _ in range(num_steps):
        h_new = jax.nn.sigmoid(h @ params["w_hh"].T + params["b_hh"] + x_proj)
        h = (1.0 - alpha) * h + alpha * h_new
    hid = jnp.maximum(h @ params["w1"].T + params["b1"], 0.0)
    pred = hid @ params["w2"].T + params["b2"]
    return pred, h


if __name__ == "__main__":
    # Small shapes consistent with the module's forward.
    B, C, H, W = 2, 4, 16, 16          # input image  [B, C, H, W]
    I = C * H * W                      # flattened input size = 1024
    N = 128                            # hidden units (rnn output size)
    FC = 64                            # fc_dim
    NUM_CLASSES = 16
    T = 8                              # num_steps

    key = jax.random.PRNGKey(0)
    ks = jax.random.split(key, 8)

    params = {
        "w_ih": 0.05 * jax.random.normal(ks[0], (N, I), jnp.float32),
        "b_ih": 0.01 * jax.random.normal(ks[1], (N,), jnp.float32),
        "w_hh": 0.05 * jax.random.normal(ks[2], (N, N), jnp.float32),
        "b_hh": 0.01 * jax.random.normal(ks[3], (N,), jnp.float32),
        # tau = 1 + softplus(tau_param) >= 1
        "tau": 1.0 + jax.nn.softplus(jax.random.normal(ks[4], (N,), jnp.float32)),
        "w1": 0.05 * jax.random.normal(ks[5], (FC, N), jnp.float32),
        "b1": jnp.zeros((FC,), jnp.float32),
        "w2": 0.05 * jax.random.normal(ks[6], (NUM_CLASSES, FC), jnp.float32),
        "b2": jnp.zeros((NUM_CLASSES,), jnp.float32),
    }

    x = jax.random.normal(ks[7], (B, C, H, W), jnp.float32)

    # One-time parameter prep (transpose / pad / bf16) — NOT per forward call.
    prep = prepare_params(params)
    prep = jax.block_until_ready(prep)

    pred, hn = spatially_embedded_classifier_forward(x, prep, T, NUM_CLASSES)
    jax.block_until_ready((pred, hn))

    pred_ref, hn_ref = reference_forward(x, params, T)

    assert pred.shape == (B, NUM_CLASSES)
    assert hn.shape == (B, N)
    # bf16 MXU feeds (f32 accumulation) -> relaxed tolerance vs. the f32 reference.
    np.testing.assert_allclose(np.asarray(hn), np.asarray(hn_ref), rtol=2e-2, atol=2e-2)
    np.testing.assert_allclose(np.asarray(pred), np.asarray(pred_ref), rtol=2e-2, atol=2e-2)

    print("KERNEL_OK")
</pallas_src>

<mosaic_0001>
module attributes {stable_mosaic.version = 11 : i64} {
  func.func @_fused_forward_kernel(%arg0: i32, %arg1: memref<8x1024xbf16, #tpu.memory_space<vmem>>, %arg2: memref<1024x128xbf16, #tpu.memory_space<vmem>>, %arg3: memref<1x128xf32, #tpu.memory_space<vmem>>, %arg4: memref<128x128xbf16, #tpu.memory_space<vmem>>, %arg5: memref<1x128xf32, #tpu.memory_space<vmem>>, %arg6: memref<128x128xbf16, #tpu.memory_space<vmem>>, %arg7: memref<1x128xf32, #tpu.memory_space<vmem>>, %arg8: memref<128x128xbf16, #tpu.memory_space<vmem>>, %arg9: memref<1x128xf32, #tpu.memory_space<vmem>>, %arg10: memref<8x128xf32, #tpu.memory_space<vmem>>, %arg11: memref<8x128xf32, #tpu.memory_space<vmem>>) attributes {dimension_semantics = [#tpu.dimension_semantics<parallel>], iteration_bounds = array<i64: 1>, scalar_prefetch = 0 : i64, scratch_operands = 0 : i64, tpu.core_type = #tpu.core_type<tc>, window_params = [{transform_indices = @transform_0, window_bounds = array<i64: 8, 1024>}, {pipeline_mode = #tpu.pipeline_mode<synchronous>, transform_indices = @transform_1, window_bounds = array<i64: 1024, 128>}, {pipeline_mode = #tpu.pipeline_mode<synchronous>, transform_indices = @transform_2, window_bounds = array<i64: 1, 128>}, {pipeline_mode = #tpu.pipeline_mode<synchronous>, transform_indices = @transform_3, window_bounds = array<i64: 128, 128>}, {pipeline_mode = #tpu.pipeline_mode<synchronous>, transform_indices = @transform_4, window_bounds = array<i64: 1, 128>}, {pipeline_mode = #tpu.pipeline_mode<synchronous>, transform_indices = @transform_5, window_bounds = array<i64: 128, 128>}, {pipeline_mode = #tpu.pipeline_mode<synchronous>, transform_indices = @transform_6, window_bounds = array<i64: 1, 128>}, {pipeline_mode = #tpu.pipeline_mode<synchronous>, transform_indices = @transform_7, window_bounds = array<i64: 128, 128>}, {pipeline_mode = #tpu.pipeline_mode<synchronous>, transform_indices = @transform_8, window_bounds = array<i64: 1, 128>}, {transform_indices = @transform_9, window_bounds = array<i64: 8, 128>}, {transform_indices = @transform_10, window_bounds = array<i64: 8, 128>}]} {
    %c0 = arith.constant 0 : index
    %c0_0 = arith.constant 0 : index
    %0 = vector.load %arg1[%c0, %c0_0] : memref<8x1024xbf16, #tpu.memory_space<vmem>>, vector<8x1024xbf16>
    %c0_1 = arith.constant 0 : index
    %c0_2 = arith.constant 0 : index
    %1 = vector.load %arg2[%c0_1, %c0_2] : memref<1024x128xbf16, #tpu.memory_space<vmem>>, vector<1024x128xbf16>
    %cst = arith.constant dense<0.000000e+00> : vector<8x128xf32>
    %2 = tpu.matmul %0, %1, %cst {dimension_numbers = #tpu.dot_dimension_numbers<[1], [0], [0], [1], [0, 0, 1, 1], [], []>} : vector<8x1024xbf16>, vector<1024x128xbf16>, vector<8x128xf32> -> vector<8x128xf32>
    %c0_3 = arith.constant 0 : index
    %c0_4 = arith.constant 0 : index
    %3 = vector.load %arg3[%c0_3, %c0_4] : memref<1x128xf32, #tpu.memory_space<vmem>>, vector<1x128xf32>
    %4 = vector.broadcast %3 : vector<1x128xf32> to vector<8x128xf32>
    %5 = arith.addf %2, %4 : vector<8x128xf32>
    %c0_5 = arith.constant 0 : index
    %c0_6 = arith.constant 0 : index
    %6 = vector.load %arg4[%c0_5, %c0_6] : memref<128x128xbf16, #tpu.memory_space<vmem>>, vector<128x128xbf16>
    %c0_7 = arith.constant 0 : index
    %c0_8 = arith.constant 0 : index
    %7 = vector.load %arg5[%c0_7, %c0_8] : memref<1x128xf32, #tpu.memory_space<vmem>>, vector<1x128xf32>
    %8 = vector.shape_cast %7 : vector<1x128xf32> to vector<1x128xf32>
    %9 = vector.broadcast %8 : vector<1x128xf32> to vector<8x128xf32>
    %cst_9 = arith.constant 0.000000e+00 : f32
    %10 = vector.broadcast %cst_9 : f32 to vector<8x128xf32>
    %c0_i32 = arith.constant 0 : i32
    %11 = arith.truncf %10 : vector<8x128xf32> to vector<8x128xbf16>
    %cst_10 = arith.constant dense<0.000000e+00> : vector<8x128xf32>
    %12 = tpu.matmul %11, %6, %cst_10 {dimension_numbers = #tpu.dot_dimension_numbers<[1], [0], [0], [1], [0, 0, 1, 1], [], []>} : vector<8x128xbf16>, vector<128x128xbf16>, vector<8x128xf32> -> vector<8x128xf32>
    %13 = arith.addf %12, %5 : vector<8x128xf32>
    %14 = arith.negf %13 : vector<8x128xf32>
    %15 = math.exp %14 : vector<8x128xf32>
    %cst_11 = arith.constant 1.000000e+00 : f32
    %16 = vector.broadcast %cst_11 : f32 to vector<8x128xf32>
    %17 = arith.addf %16, %15 : vector<8x128xf32>
    %18 = arith.divf %16, %17 : vector<8x128xf32>
    %19 = arith.subf %18, %10 : vector<8x128xf32>
    %20 = arith.mulf %9, %19 : vector<8x128xf32>
    %21 = arith.addf %10, %20 : vector<8x128xf32>
    %c1_i32 = arith.constant 1 : i32
    %22 = arith.truncf %21 : vector<8x128xf32> to vector<8x128xbf16>
    %cst_12 = arith.constant dense<0.000000e+00> : vector<8x128xf32>
    %23 = tpu.matmul %22, %6, %cst_12 {dimension_numbers = #tpu.dot_dimension_numbers<[1], [0], [0], [1], [0, 0, 1, 1], [], []>} : vector<8x128xbf16>, vector<128x128xbf16>, vector<8x128xf32> -> vector<8x128xf32>
    %24 = arith.addf %23, %5 : vector<8x128xf32>
    %25 = arith.negf %24 : vector<8x128xf32>
    %26 = math.exp %25 : vector<8x128xf32>
    %cst_13 = arith.constant 1.000000e+00 : f32
    %27 = vector.broadcast %cst_13 : f32 to vector<8x128xf32>
    %28 = arith.addf %27, %26 : vector<8x128xf32>
    %29 = arith.divf %27, %28 : vector<8x128xf32>
    %30 = arith.subf %29, %21 : vector<8x128xf32>
    %31 = arith.mulf %9, %30 : vector<8x128xf32>
    %32 = arith.addf %21, %31 : vector<8x128xf32>
    %c2_i32 = arith.constant 2 : i32
    %33 = arith.truncf %32 : vector<8x128xf32> to vector<8x128xbf16>
    %cst_14 = arith.constant dense<0.000000e+00> : vector<8x128xf32>
    %34 = tpu.matmul %33, %6, %cst_14 {dimension_numbers = #tpu.dot_dimension_numbers<[1], [0], [0], [1], [0, 0, 1, 1], [], []>} : vector<8x128xbf16>, vector<128x128xbf16>, vector<8x128xf32> -> vector<8x128xf32>
    %35 = arith.addf %34, %5 : vector<8x128xf32>
    %36 = arith.negf %35 : vector<8x128xf32>
    %37 = math.exp %36 : vector<8x128xf32>
    %cst_15 = arith.constant 1.000000e+00 : f32
    %38 = vector.broadcast %cst_15 : f32 to vector<8x128xf32>
    %39 = arith.addf %38, %37 : vector<8x128xf32>
    %40 = arith.divf %38, %39 : vector<8x128xf32>
    %41 = arith.subf %40, %32 : vector<8x128xf32>
    %42 = arith.mulf %9, %41 : vector<8x128xf32>
    %43 = arith.addf %32, %42 : vector<8x128xf32>
    %c3_i32 = arith.constant 3 : i32
    %44 = arith.truncf %43 : vector<8x128xf32> to vector<8x128xbf16>
    %cst_16 = arith.constant dense<0.000000e+00> : vector<8x128xf32>
    %45 = tpu.matmul %44, %6, %cst_16 {dimension_numbers = #tpu.dot_dimension_numbers<[1], [0], [0], [1], [0, 0, 1, 1], [], []>} : vector<8x128xbf16>, vector<128x128xbf16>, vector<8x128xf32> -> vector<8x128xf32>
    %46 = arith.addf %45, %5 : vector<8x128xf32>
    %47 = arith.negf %46 : vector<8x128xf32>
    %48 = math.exp %47 : vector<8x128xf32>
    %cst_17 = arith.constant 1.000000e+00 : f32
    %49 = vector.broadcast %cst_17 : f32 to vector<8x128xf32>
    %50 = arith.addf %49, %48 : vector<8x128xf32>
    %51 = arith.divf %49, %50 : vector<8x128xf32>
    %52 = arith.subf %51, %43 : vector<8x128xf32>
    %53 = arith.mulf %9, %52 : vector<8x128xf32>
    %54 = arith.addf %43, %53 : vector<8x128xf32>
    %c4_i32 = arith.constant 4 : i32
    %55 = arith.truncf %54 : vector<8x128xf32> to vector<8x128xbf16>
    %cst_18 = arith.constant dense<0.000000e+00> : vector<8x128xf32>
    %56 = tpu.matmul %55, %6, %cst_18 {dimension_numbers = #tpu.dot_dimension_numbers<[1], [0], [0], [1], [0, 0, 1, 1], [], []>} : vector<8x128xbf16>, vector<128x128xbf16>, vector<8x128xf32> -> vector<8x128xf32>
    %57 = arith.addf %56, %5 : vector<8x128xf32>
    %58 = arith.negf %57 : vector<8x128xf32>
    %59 = math.exp %58 : vector<8x128xf32>
    %cst_19 = arith.constant 1.000000e+00 : f32
    %60 = vector.broadcast %cst_19 : f32 to vector<8x128xf32>
    %61 = arith.addf %60, %59 : vector<8x128xf32>
    %62 = arith.divf %60, %61 : vector<8x128xf32>
    %63 = arith.subf %62, %54 : vector<8x128xf32>
    %64 = arith.mulf %9, %63 : vector<8x128xf32>
    %65 = arith.addf %54, %64 : vector<8x128xf32>
    %c5_i32 = arith.constant 5 : i32
    %66 = arith.truncf %65 : vector<8x128xf32> to vector<8x128xbf16>
    %cst_20 = arith.constant dense<0.000000e+00> : vector<8x128xf32>
    %67 = tpu.matmul %66, %6, %cst_20 {dimension_numbers = #tpu.dot_dimension_numbers<[1], [0], [0], [1], [0, 0, 1, 1], [], []>} : vector<8x128xbf16>, vector<128x128xbf16>, vector<8x128xf32> -> vector<8x128xf32>
    %68 = arith.addf %67, %5 : vector<8x128xf32>
    %69 = arith.negf %68 : vector<8x128xf32>
    %70 = math.exp %69 : vector<8x128xf32>
    %cst_21 = arith.constant 1.000000e+00 : f32
    %71 = vector.broadcast %cst_21 : f32 to vector<8x128xf32>
    %72 = arith.addf %71, %70 : vector<8x128xf32>
    %73 = arith.divf %71, %72 : vector<8x128xf32>
    %74 = arith.subf %73, %65 : vector<8x128xf32>
    %75 = arith.mulf %9, %74 : vector<8x128xf32>
    %76 = arith.addf %65, %75 : vector<8x128xf32>
    %c6_i32 = arith.constant 6 : i32
    %77 = arith.truncf %76 : vector<8x128xf32> to vector<8x128xbf16>
    %cst_22 = arith.constant dense<0.000000e+00> : vector<8x128xf32>
    %78 = tpu.matmul %77, %6, %cst_22 {dimension_numbers = #tpu.dot_dimension_numbers<[1], [0], [0], [1], [0, 0, 1, 1], [], []>} : vector<8x128xbf16>, vector<128x128xbf16>, vector<8x128xf32> -> vector<8x128xf32>
    %79 = arith.addf %78, %5 : vector<8x128xf32>
    %80 = arith.negf %79 : vector<8x128xf32>
    %81 = math.exp %80 : vector<8x128xf32>
    %cst_23 = arith.constant 1.000000e+00 : f32
    %82 = vector.broadcast %cst_23 : f32 to vector<8x128xf32>
    %83 = arith.addf %82, %81 : vector<8x128xf32>
    %84 = arith.divf %82, %83 : vector<8x128xf32>
    %85 = arith.subf %84, %76 : vector<8x128xf32>
    %86 = arith.mulf %9, %85 : vector<8x128xf32>
    %87 = arith.addf %76, %86 : vector<8x128xf32>
    %c7_i32 = arith.constant 7 : i32
    %88 = arith.truncf %87 : vector<8x128xf32> to vector<8x128xbf16>
    %cst_24 = arith.constant dense<0.000000e+00> : vector<8x128xf32>
    %89 = tpu.matmul %88, %6, %cst_24 {dimension_numbers = #tpu.dot_dimension_numbers<[1], [0], [0], [1], [0, 0, 1, 1], [], []>} : vector<8x128xbf16>, vector<128x128xbf16>, vector<8x128xf32> -> vector<8x128xf32>
    %90 = arith.addf %89, %5 : vector<8x128xf32>
    %91 = arith.negf %90 : vector<8x128xf32>
    %92 = math.exp %91 : vector<8x128xf32>
    %cst_25 = arith.constant 1.000000e+00 : f32
    %93 = vector.broadcast %cst_25 : f32 to vector<8x128xf32>
    %94 = arith.addf %93, %92 : vector<8x128xf32>
    %95 = arith.divf %93, %94 : vector<8x128xf32>
    %96 = arith.subf %95, %87 : vector<8x128xf32>
    %97 = arith.mulf %9, %96 : vector<8x128xf32>
    %98 = arith.addf %87, %97 : vector<8x128xf32>
    %c0_26 = arith.constant 0 : index
    %c0_27 = arith.constant 0 : index
    %99 = vector.load %arg11[%c0_26, %c0_27] : memref<8x128xf32, #tpu.memory_space<vmem>>, vector<8x128xf32>
    tpu.vector_store %arg11[%c0_26, %c0_27], %98 {strides = array<i32>} : memref<8x128xf32, #tpu.memory_space<vmem>>, vector<8x128xf32>,
    %100 = arith.truncf %98 : vector<8x128xf32> to vector<8x128xbf16>
    %c0_28 = arith.constant 0 : index
    %c0_29 = arith.constant 0 : index
    %101 = vector.load %arg6[%c0_28, %c0_29] : memref<128x128xbf16, #tpu.memory_space<vmem>>, vector<128x128xbf16>
    %cst_30 = arith.constant dense<0.000000e+00> : vector<8x128xf32>
    %102 = tpu.matmul %100, %101, %cst_30 {dimension_numbers = #tpu.dot_dimension_numbers<[1], [0], [0], [1], [0, 0, 1, 1], [], []>} : vector<8x128xbf16>, vector<128x128xbf16>, vector<8x128xf32> -> vector<8x128xf32>
    %c0_31 = arith.constant 0 : index
    %c0_32 = arith.constant 0 : index
    %103 = vector.load %arg7[%c0_31, %c0_32] : memref<1x128xf32, #tpu.memory_space<vmem>>, vector<1x128xf32>
    %104 = vector.broadcast %103 : vector<1x128xf32> to vector<8x128xf32>
    %105 = arith.addf %102, %104 : vector<8x128xf32>
    %cst_33 = arith.constant 0.000000e+00 : f32
    %106 = vector.broadcast %cst_33 : f32 to vector<8x128xf32>
    %107 = arith.maximumf %105, %106 : vector<8x128xf32>
    %108 = arith.truncf %107 : vector<8x128xf32> to vector<8x128xbf16>
    %c0_34 = arith.constant 0 : index
    %c0_35 = arith.constant 0 : index
    %109 = vector.load %arg8[%c0_34, %c0_35] : memref<128x128xbf16, #tpu.memory_space<vmem>>, vector<128x128xbf16>
    %cst_36 = arith.constant dense<0.000000e+00> : vector<8x128xf32>
    %110 = tpu.matmul %108, %109, %cst_36 {dimension_numbers = #tpu.dot_dimension_numbers<[1], [0], [0], [1], [0, 0, 1, 1], [], []>} : vector<8x128xbf16>, vector<128x128xbf16>, vector<8x128xf32> -> vector<8x128xf32>
    %c0_37 = arith.constant 0 : index
    %c0_38 = arith.constant 0 : index
    %111 = vector.load %arg9[%c0_37, %c0_38] : memref<1x128xf32, #tpu.memory_space<vmem>>, vector<1x128xf32>
    %112 = vector.broadcast %111 : vector<1x128xf32> to vector<8x128xf32>
    %113 = arith.addf %110, %112 : vector<8x128xf32>
    %c0_39 = arith.constant 0 : index
    %c0_40 = arith.constant 0 : index
    %114 = vector.load %arg10[%c0_39, %c0_40] : memref<8x128xf32, #tpu.memory_space<vmem>>, vector<8x128xf32>
    tpu.vector_store %arg10[%c0_39, %c0_40], %113 {strides = array<i32>} : memref<8x128xf32, #tpu.memory_space<vmem>>, vector<8x128xf32>,
    return
  }
  func.func @transform_0(%arg0: i32) -> (i32, i32) {
    %c0_i32 = arith.constant 0 : i32
    %c0_i32_0 = arith.constant 0 : i32
    return %arg0, %c0_i32 : i32, i32
  }
  func.func @transform_1(%arg0: i32) -> (i32, i32) {
    %c0_i32 = arith.constant 0 : i32
    %c0_i32_0 = arith.constant 0 : i32
    %c0_i32_1 = arith.constant 0 : i32
    return %c0_i32, %c0_i32_0 : i32, i32
  }
  func.func @transform_2(%arg0: i32) -> (i32, i32) {
    %c0_i32 = arith.constant 0 : i32
    %c0_i32_0 = arith.constant 0 : i32
    %c0_i32_1 = arith.constant 0 : i32
    return %c0_i32, %c0_i32_0 : i32, i32
  }
  func.func @transform_3(%arg0: i32) -> (i32, i32) {
    %c0_i32 = arith.constant 0 : i32
    %c0_i32_0 = arith.constant 0 : i32
    %c0_i32_1 = arith.constant 0 : i32
    return %c0_i32, %c0_i32_0 : i32, i32
  }
  func.func @transform_4(%arg0: i32) -> (i32, i32) {
    %c0_i32 = arith.constant 0 : i32
    %c0_i32_0 = arith.constant 0 : i32
    %c0_i32_1 = arith.constant 0 : i32
    return %c0_i32, %c0_i32_0 : i32, i32
  }
  func.func @transform_5(%arg0: i32) -> (i32, i32) {
    %c0_i32 = arith.constant 0 : i32
    %c0_i32_0 = arith.constant 0 : i32
    %c0_i32_1 = arith.constant 0 : i32
    return %c0_i32, %c0_i32_0 : i32, i32
  }
  func.func @transform_6(%arg0: i32) -> (i32, i32) {
    %c0_i32 = arith.constant 0 : i32
    %c0_i32_0 = arith.constant 0 : i32
    %c0_i32_1 = arith.constant 0 : i32
    return %c0_i32, %c0_i32_0 : i32, i32
  }
  func.func @transform_7(%arg0: i32) -> (i32, i32) {
    %c0_i32 = arith.constant 0 : i32
    %c0_i32_0 = arith.constant 0 : i32
    %c0_i32_1 = arith.constant 0 : i32
    return %c0_i32, %c0_i32_0 : i32, i32
  }
  func.func @transform_8(%arg0: i32) -> (i32, i32) {
    %c0_i32 = arith.constant 0 : i32
    %c0_i32_0 = arith.constant 0 : i32
    %c0_i32_1 = arith.constant 0 : i32
    return %c0_i32, %c0_i32_0 : i32, i32
  }
  func.func @transform_9(%arg0: i32) -> (i32, i32) {
    %c0_i32 = arith.constant 0 : i32
    %c0_i32_0 = arith.constant 0 : i32
    return %arg0, %c0_i32 : i32, i32
  }
  func.func @transform_10(%arg0: i32) -> (i32, i32) {
    %c0_i32 = arith.constant 0 : i32
    %c0_i32_0 = arith.constant 0 : i32
    return %arg0, %c0_i32 : i32, i32
  }
}

</mosaic_0001>

<bundles_post_ra>
// kernel: spatially_embedded_classifier_forward.1
= control target key start
LH: loop header
LB: loop body
LE: loop exit
PB: predicated region body
PF: predicated region fallthrough
CT: control target
= control target key end

     0   :  { %16 = vsyncpa [#allocation3], 0  ;;  %s2107_s13 = smov [#allocation2]   ;;  %s2473_s0 = inlined_call_operand.vmem [shape: bf16[8,1024], index: 0, kind: input, shape index: {}]   ;;  %s2474_s1 = inlined_call_operand.hbm [shape: bf16[1024,128], index: 1, kind: input, shape index: {}]   ;;  %s2475_s2 = inlined_call_operand.vmem [shape: f32[1,128], index: 2, kind: input, shape index: {}]   ;;  %s2476_s3 = inlined_call_operand.vmem [shape: bf16[128,128], index: 3, kind: input, shape index: {}]   ;;  %s2477_s4 = inlined_call_operand.vmem [shape: f32[1,128], index: 4, kind: input, shape index: {}]   ;;  %s2478_s5 = inlined_call_operand.vmem [shape: bf16[128,128], index: 5, kind: input, shape index: {}]   ;;  %s2479_s6 = inlined_call_operand.vmem [shape: f32[1,128], index: 6, kind: input, shape index: {}]   ;;  %s2480_s7 = inlined_call_operand.vmem [shape: bf16[128,128], index: 7, kind: input, shape index: {}]   ;;  %s2481_s8 = inlined_call_operand.vmem [shape: f32[1,128], index: 8, kind: input, shape index: {}]   ;;  %s2482_s9 = inlined_call_operand.vmem [shape: f32[8,128], index: 9, kind: output, shape index: {0}]   ;;  %s2483_s10 = inlined_call_operand.vmem [shape: f32[8,128], index: 10, kind: output, shape index: {1}]  }
   0x1   :  { %s24_s14 = sshll.u32 %s2107_s13, 4  ;;  %s25_s14 = int_to_ptr.vmem [resolvable:$true] %s24_s14 }
   0x2   :  { %s2093_s15 = scalar_lea.vmem %s25_s14, 8192  ;;  %p2098_p1 = scmp.lt.s32.totalorder %s25_s14, %s25_s14 }
   0x3   :  { %p2094_p0 = scmp.ne.s32.totalorder %s25_s14, %s2093_s15  ;;  %p2099_p2 = scmp.lt.s32.totalorder %s2093_s15, %s2093_s15 }
   0x5   :  { %p2100_p3 = por %p2099_p2, %p2098_p1 }
   0x7   :  { %p2101_p4 = pnand %p2100_p3, %p2094_p0 }
   0x9   :  { %2104 = shalt.err (!%p2101_p4)
}
   0xa   :  { %s2108_s16 = smov 64   ;;  %s2109_s17 = smov 4  }
   0xb   :  { %30 = dma.hbm_to_vmem [thread:$0]  %s2474_s1, 8192, %s25_s14, [#allocation3], %s2108_s16, %s2108_s16, %s2109_s17  }
   0xc   :  { %2105 = dma.done.wait [#allocation3], 8192  }
   0xd   :  { %2106 = vsyncadd [#allocation3], 4294959104  ;;  %v1957_v0 = vld [vmem:[#allocation2 + $0x78] sm:$0xff]   ;;  %v1961_v4 = vld [vmem:[#allocation2 + $0x70] sm:$0xff]   ;;  %vm2111_vm0 = vmmov 0  }
   0xe   :  { %v1958_v1 = vld [vmem:[#allocation2 + $0x38] sm:$0xff]   ;;  %1573 = vmatprep.subr.bf16.mxu0 %v1957_v0  ;;  %v1962_v5 = vld [vmem:[#allocation2 + $0x30] sm:$0xff]   ;;  %v1965_v8 = vld [vmem:[#allocation2 + $0x68] sm:$0xff]  }
   0xf   :  { %v1959_v2 = vld [vmem:[#allocation2 + $0xf8] sm:$0xff]   ;;  %1574 = vmatpush3.bf16.msra.mxu0 %v1958_v1  ;;  %v1963_v6 = vld [vmem:[#allocation2 + $0xf0] sm:$0xff]   ;;  %v1966_v9 = vld [vmem:[#allocation2 + $0x28] sm:$0xff]  }
  0x10   :  { %v1960_v3 = vld [vmem:[#allocation2 + $0xb8] sm:$0xff]   ;;  %1595 = vmatprep.subr.bf16.mxu1 %v1959_v2  ;;  %1575 = vmatprep.subr.bf16.mxu0 %v1961_v4  ;;  %v1964_v7 = vld [vmem:[#allocation2 + $0xb0] sm:$0xff]   ;;  %v1967_v10 = vld [vmem:[#allocation2 + $0xe8] sm:$0xff]  }
  0x11   :  { %1596 = vmatpush3.bf16.msra.mxu1 %v1960_v3  ;;  %v1968_v11 = vld [vmem:[#allocation2 + $0xa8] sm:$0xff]   ;;  %v1969_v12 = vld [vmem:[#allocation2 + $0x60] sm:$0xff]   ;;  %v1973_v16 = vld [vmem:[#allocation2 + $0x58] sm:$0xff]  }
  0x12   :  { %1597 = vmatprep.subr.bf16.mxu1 %v1963_v6  ;;  %v1970_v13 = vld [vmem:[#allocation2 + $0x20] sm:$0xff]   ;;  %v1974_v17 = vld [vmem:[#allocation2 + $0x18] sm:$0xff]   ;;  %v1977_v20 = vld [vmem:[#allocation2 + $0x50] sm:$0xff]  }
  0x13   :  { %1576 = vmatpush3.bf16.msra.mxu0 %v1962_v5  ;;  %v1971_v14 = vld [vmem:[#allocation2 + $0xe0] sm:$0xff]   ;;  %v1975_v18 = vld [vmem:[#allocation2 + $0xd8] sm:$0xff]   ;;  %v1978_v21 = vld [vmem:[#allocation2 + $0x10] sm:$0xff]  }
  0x14   :  { %1577 = vmatprep.subr.bf16.mxu0 %v1965_v8  ;;  %v1972_v15 = vld [vmem:[#allocation2 + $0xa0] sm:$0xff]   ;;  %v1976_v19 = vld [vmem:[#allocation2 + $0x98] sm:$0xff]   ;;  %v1979_v22 = vld [vmem:[#allocation2 + $0xd0] sm:$0xff]  }
  0x15   :  { %1598 = vmatpush3.bf16.msra.mxu1 %v1964_v7  ;;  %v1980_v23 = vld [vmem:[#allocation2 + $0x90] sm:$0xff]   ;;  %v1981_v24 = vld [vmem:[#allocation2 + $0x48] sm:$0xff]   ;;  %v1985_v28 = vld [vmem:[#allocation2 + $0x40] sm:$0xff]  }
  0x16   :  { %1599 = vmatprep.subr.bf16.mxu1 %v1967_v10  ;;  %v1982_v25 = vld [vmem:[#allocation2 + $0x8] sm:$0xff]   ;;  %v1986_v29 = vld [vmem:[#allocation2] sm:$0xff]   ;;  %v1991_v35 = vld [vmem:[#allocation2 + $0x178] sm:$0xff]  }
  0x17   :  { %1578 = vmatpush3.bf16.msra.mxu0 %v1966_v9  ;;  %v1983_v26 = vld [vmem:[#allocation2 + $0xc8] sm:$0xff]   ;;  %v1987_v30 = vld [vmem:[#allocation2 + $0xc0] sm:$0xff]   ;;  %v1994_v39 = vld [vmem:[#allocation2 + $0x138] sm:$0xff]   ;;  %v2110_v9 = vmov 0.0  }
  0x18   :  { %1579 = vmatprep.subr.bf16.mxu0 %v1969_v12  ;;  %v1984_v27 = vld [vmem:[#allocation2 + $0x88] sm:$0xff]   ;;  %v49_v31 = vld [vmem:[%s2473_s0] sm:$0xff]  ;;  %v1995_v40 = vld [vmem:[#allocation2 + $0x1f8] sm:$0xff]  }
  0x19   :  { %1600 = vmatpush3.bf16.msra.mxu1 %v1968_v11  ;;  %v1466_v32 = vcombine.low %v49_v31, %v49_v31  ;;  %v1467_v33 = vcombine.high %v49_v31, %v49_v31  ;;  %v1990_v34 = vld [vmem:[#allocation2 + $0x80] sm:$0xff]   ;;  %v50_v36 = vld [vmem:[%s2473_s0 + $0x8] sm:$0xff]  ;;  %v1996_v41 = vld [vmem:[#allocation2 + $0x1b8] sm:$0xff]  }
  0x1a   :  { %1601 = vmatprep.subr.bf16.mxu1 %v1971_v14  ;;  %v1468_v37 = vcombine.low %v50_v36, %v50_v36  ;;  %v1469_v38 = vcombine.high %v50_v36, %v50_v36  ;;  %v1997_v42 = vld [vmem:[#allocation2 + $0x170] sm:$0xff]   ;;  %v2001_v46 = vld [vmem:[#allocation2 + $0x168] sm:$0xff]   ;;  %v2005_v50 = vld [vmem:[#allocation2 + $0x160] sm:$0xff]  }
  0x1b   :  { %1580 = vmatpush3.bf16.msra.mxu0 %v1970_v13  ;;  %632 = vmatprep.mubr.bf16.mxu0 %v1467_v33  ;;  %v1998_v43 = vld [vmem:[#allocation2 + $0x130] sm:$0xff]   ;;  %v2002_v47 = vld [vmem:[#allocation2 + $0x128] sm:$0xff]   ;;  %v2006_v51 = vld [vmem:[#allocation2 + $0x120] sm:$0xff]  }
  0x1c   :  { %1581 = vmatprep.subr.bf16.mxu0 %v1973_v16  ;;  %672 = vmatprep.mubr.bf16.mxu1 %v1469_v38  ;;  %v1999_v44 = vld [vmem:[#allocation2 + $0x1f0] sm:$0xff]   ;;  %v2003_v48 = vld [vmem:[#allocation2 + $0x1e8] sm:$0xff]   ;;  %v2007_v52 = vld [vmem:[#allocation2 + $0x1e0] sm:$0xff]  }
  0x1d   :  { %1602 = vmatpush3.bf16.msra.mxu1 %v1972_v15  ;;  %v2000_v45 = vld [vmem:[#allocation2 + $0x1b0] sm:$0xff]   ;;  %v2004_v49 = vld [vmem:[#allocation2 + $0x1a8] sm:$0xff]   ;;  %v2008_v53 = vld [vmem:[#allocation2 + $0x1a0] sm:$0xff]  }
  0x1e   :  { %1603 = vmatprep.subr.bf16.mxu1 %v1975_v18  ;;  %v2009_v54 = vld [vmem:[#allocation2 + $0x158] sm:$0xff]   ;;  %v2013_v58 = vld [vmem:[#allocation2 + $0x150] sm:$0xff]   ;;  %v2017_v62 = vld [vmem:[#allocation2 + $0x148] sm:$0xff]  }
  0x1f   :  { %1582 = vmatpush3.bf16.msra.mxu0 %v1974_v17  ;;  %v2010_v55 = vld [vmem:[#allocation2 + $0x118] sm:$0xff]   ;;  %v2014_v59 = vld [vmem:[#allocation2 + $0x110] sm:$0xff]   ;;  %v2018_v63 = vld [vmem:[#allocation2 + $0x108] sm:$0xff]  }
  0x20   :  { %1583 = vmatprep.subr.bf16.mxu0 %v1977_v20  ;;  %v2011_v56 = vld [vmem:[#allocation2 + $0x1d8] sm:$0xff]   ;;  %v2015_v60 = vld [vmem:[#allocation2 + $0x1d0] sm:$0xff]   ;;  %v2019_v0 = vld [vmem:[#allocation2 + $0x1c8] sm:$0xff]  }
  0x21   :  { %1604 = vmatpush3.bf16.msra.mxu1 %v1976_v19  ;;  %v2012_v57 = vld [vmem:[#allocation2 + $0x198] sm:$0xff]   ;;  %v2016_v61 = vld [vmem:[#allocation2 + $0x190] sm:$0xff]   ;;  %v2020_v1 = vld [vmem:[#allocation2 + $0x188] sm:$0xff]  }
  0x22   :  { %1605 = vmatprep.subr.bf16.mxu1 %v1979_v22  ;;  %v2021_v2 = vld [vmem:[#allocation2 + $0x140] sm:$0xff]   ;;  %v51_v5 = vld [vmem:[%s2473_s0 + $0x10] sm:$0xff]  ;;  %v52_v10 = vld [vmem:[%s2473_s0 + $0x18] sm:$0xff] }
  0x23   :  { %1584 = vmatpush3.bf16.msra.mxu0 %v1978_v21  ;;  %v2022_v3 = vld [vmem:[#allocation2 + $0x100] sm:$0xff]   ;;  %v1470_v6 = vcombine.low %v51_v5, %v51_v5  ;;  %v1471_v7 = vcombine.high %v51_v5, %v51_v5  ;;  %v1472_v11 = vcombine.low %v52_v10, %v52_v10  ;;  %v1473_v12 = vcombine.high %v52_v10, %v52_v10  ;;  %v2187_v13 = vld [vmem:[%s2476_s3 + $0x38] sm:$0xff]   ;;  %v2194_v14 = vld [vmem:[%s2476_s3 + $0x30] sm:$0xff]  }
  0x24   :  { %1585 = vmatprep.subr.bf16.mxu0 %v1981_v24  ;;  %v2023_v4 = vld [vmem:[#allocation2 + $0x1c0] sm:$0xff]   ;;  %v2207_v15 = vld [vmem:[%s2476_s3 + $0x28] sm:$0xff]   ;;  %v2222_v17 = vld [vmem:[%s2476_s3 + $0x18] sm:$0xff]   ;;  %v2112_v21 = vmov 0  }
  0x25   :  { %1606 = vmatpush3.bf16.msra.mxu1 %v1980_v23  ;;  %v2026_v8 = vld [vmem:[#allocation2 + $0x180] sm:$0xff]   ;;  %v2234_v18 = vld [vmem:[%s2476_s3 + $0x10] sm:$0xff]   ;;  %v2243_v19 = vld [vmem:[%s2476_s3 + $0x8] sm:$0xff]  }
  0x26   :  { %1607 = vmatprep.subr.bf16.mxu1 %v1983_v26  ;;  %v2213_v16 = vld [vmem:[%s2476_s3 + $0x20] sm:$0xff]  }
  0x27   :  { %1586 = vmatpush3.bf16.msra.mxu0 %v1982_v25  ;;  %v2252_v20 = vld [vmem:[%s2476_s3] sm:$0xff]  }
  0x28   :  { %1587 = vmatprep.subr.bf16.mxu0 %v1985_v28 }
  0x29   :  { %1608 = vmatpush3.bf16.msra.mxu1 %v1984_v27 }
  0x2a   :  { %1609 = vmatprep.subr.bf16.mxu1 %v1987_v30 }
  0x2b   :  { %1588 = vmatpush3.bf16.msra.mxu0 %v1986_v29 }
  0x2c   :  { %1617 = vmatprep.subr.bf16.mxu0 %v1991_v35 }
  0x2d   :  { %1610 = vmatpush3.bf16.msra.mxu1 %v1990_v34 }
  0x2e   :  { %633 = vmatmul.mubr.bf16.vlgmr.msra.gmra.mxu0 %v1466_v32  ;;  %1639 = vmatprep.subr.bf16.mxu1 %v1995_v40 }
  0x2f   :  { %1618 = vmatpush3.bf16.msra.mxu0 %v1994_v39  ;;  %712 = vmatprep.mubr.bf16.mxu0 %v1471_v7  ;;  %v1465_v39 = vld [vmem:[%s2475_s2] ss:$0 sm:$0xff] }
  0x30   :  { %673 = vmatmul.mubr.bf16.vlgmr.msra.gmra.mxu1 %v1468_v37  ;;  %1619 = vmatprep.subr.bf16.mxu0 %v1997_v42 }
  0x31   :  { %1640 = vmatpush3.bf16.msra.mxu1 %v1996_v41  ;;  %752 = vmatprep.mubr.bf16.mxu1 %v1473_v12 }
  0x32   :  { %1641 = vmatprep.subr.bf16.mxu1 %v1999_v44 }
  0x33   :  { %1620 = vmatpush3.bf16.msra.mxu0 %v1998_v43 }
  0x34   :  { %1621 = vmatprep.subr.bf16.mxu0 %v2001_v46 }
  0x35   :  { %1642 = vmatpush3.bf16.msra.mxu1 %v2000_v45 }
  0x36   :  { %1643 = vmatprep.subr.bf16.mxu1 %v2003_v48 }
  0x37   :  { %1622 = vmatpush3.bf16.msra.mxu0 %v2002_v47 }
  0x38   :  { %1623 = vmatprep.subr.bf16.mxu0 %v2005_v50 }
  0x39   :  { %1644 = vmatpush3.bf16.msra.mxu1 %v2004_v49 }
  0x3a   :  { %1645 = vmatprep.subr.bf16.mxu1 %v2007_v52 }
  0x3b   :  { %1624 = vmatpush3.bf16.msra.mxu0 %v2006_v51 }
  0x3c   :  { %1625 = vmatprep.subr.bf16.mxu0 %v2009_v54 }
  0x3d   :  { %1646 = vmatpush3.bf16.msra.mxu1 %v2008_v53 }
  0x3e   :  { %1647 = vmatprep.subr.bf16.mxu1 %v2011_v56 }
  0x3f   :  { %1626 = vmatpush3.bf16.msra.mxu0 %v2010_v55  ;;  %v2288_v55 = vld [vmem:[%s2477_s4] ss:$0 sm:$0xff] }
  0x40   :  { %1627 = vmatprep.subr.bf16.mxu0 %v2013_v58 }
  0x41   :  { %1648 = vmatpush3.bf16.msra.mxu1 %v2012_v57 }
  0x42   :  { %1649 = vmatprep.subr.bf16.mxu1 %v2015_v60 }
  0x43   :  { %1628 = vmatpush3.bf16.msra.mxu0 %v2014_v59 }
  0x44   :  { %1629 = vmatprep.subr.bf16.mxu0 %v2017_v62 }
  0x45   :  { %1650 = vmatpush3.bf16.msra.mxu1 %v2016_v61 }
  0x46   :  { %1651 = vmatprep.subr.bf16.mxu1 %v2019_v0 }
  0x47   :  { %1630 = vmatpush3.bf16.msra.mxu0 %v2018_v63 }
  0x48   :  { %1631 = vmatprep.subr.bf16.mxu0 %v2021_v2 }
  0x49   :  { %1652 = vmatpush3.bf16.msra.mxu1 %v2020_v1 }
  0x4a   :  { %1653 = vmatprep.subr.bf16.mxu1 %v2023_v4 }
  0x4b   :  { %1632 = vmatpush3.bf16.msra.mxu0 %v2022_v3 }
  0x4c   :  { %1751 = vmatprep.subr.bf16.mxu0 %v2110_v9 }
  0x4d   :  { %1654 = vmatpush3.bf16.msra.mxu1 %v2026_v8 }
  0x4e   :  { %713 = vmatmul.mubr.bf16.vlgmr.msra.gmra.mxu0 %v1470_v6  ;;  %1771 = vmatprep.subr.bf16.mxu1 %v2110_v9 }
  0x4f   :  { %1752 = vmatpush3.bf16.msra.mxu0 %v2187_v13  ;;  %1767 = vmatprep.mubr.msk.bf16.mxu0 %vm2111_vm0, %v2110_v9 }
  0x50   :  { %753 = vmatmul.mubr.bf16.vlgmr.msra.gmra.mxu1 %v1472_v11  ;;  %1753 = vmatprep.subr.bf16.mxu0 %v2110_v9 }
  0x51   :  { %1772 = vmatpush3.bf16.msra.mxu1 %v2187_v13  ;;  %1787 = vmatprep.mubr.msk.bf16.mxu1 %vm2111_vm0, %v2110_v9 }
  0x52   :  { %1773 = vmatprep.subr.bf16.mxu1 %v2110_v9 }
  0x53   :  { %1754 = vmatpush3.bf16.msra.mxu0 %v2194_v14 }
  0x54   :  { %1755 = vmatprep.subr.bf16.mxu0 %v2110_v9 }
  0x55   :  { %1774 = vmatpush3.bf16.msra.mxu1 %v2194_v14 }
  0x56   :  { %1775 = vmatprep.subr.bf16.mxu1 %v2110_v9 }
  0x57   :  { %1756 = vmatpush3.bf16.msra.mxu0 %v2207_v15 }
  0x58   :  { %1757 = vmatprep.subr.bf16.mxu0 %v2110_v9 }
  0x59   :  { %1776 = vmatpush3.bf16.msra.mxu1 %v2207_v15 }
  0x5a   :  { %1777 = vmatprep.subr.bf16.mxu1 %v2110_v9 }
  0x5b   :  { %1758 = vmatpush3.bf16.msra.mxu0 %v2213_v16 }
  0x5c   :  { %1759 = vmatprep.subr.bf16.mxu0 %v2110_v9 }
  0x5d   :  { %1778 = vmatpush3.bf16.msra.mxu1 %v2213_v16 }
  0x5e   :  { %1779 = vmatprep.subr.bf16.mxu1 %v2110_v9 }
  0x5f   :  { %1760 = vmatpush3.bf16.msra.mxu0 %v2222_v17 }
  0x60   :  { %1761 = vmatprep.subr.bf16.mxu0 %v2110_v9 }
  0x61   :  { %1780 = vmatpush3.bf16.msra.mxu1 %v2222_v17 }
  0x62   :  { %1781 = vmatprep.subr.bf16.mxu1 %v2110_v9 }
  0x63   :  { %1762 = vmatpush3.bf16.msra.mxu0 %v2234_v18 }
  0x64   :  { %1763 = vmatprep.subr.bf16.mxu0 %v2110_v9 }
  0x65   :  { %1782 = vmatpush3.bf16.msra.mxu1 %v2234_v18 }
  0x66   :  { %1783 = vmatprep.subr.bf16.mxu1 %v2110_v9 }
  0x67   :  { %1764 = vmatpush3.bf16.msra.mxu0 %v2243_v19 }
  0x68   :  { %1765 = vmatprep.subr.bf16.mxu0 %v2110_v9 }
  0x69   :  { %1784 = vmatpush3.bf16.msra.mxu1 %v2243_v19 }
  0x6a   :  { %1785 = vmatprep.subr.bf16.mxu1 %v2110_v9 }
  0x6b   :  { %1766 = vmatpush3.bf16.msra.mxu0 %v2252_v20 }
  0x6c   :  { %1791 = vmatprep.subr.bf16.mxu0 %v2110_v9 }
  0x6d   :  { %1786 = vmatpush3.bf16.msra.mxu1 %v2252_v20 }
  0x6e   :  { %1768 = vmatmul.mubr.bf16.vlgmr.msra.gmra.mxu0 %v2112_v21  ;;  %1811 = vmatprep.subr.bf16.mxu1 %v2110_v9 }
  0x6f   :  { %1792 = vmatpush3.bf16.msra.mxu0 %v2187_v13  ;;  %1807 = vmatprep.mubr.msk.bf16.mxu0 %vm2111_vm0, %v2110_v9 }
  0x70   :  { %1793 = vmatprep.subr.bf16.mxu0 %v2110_v9 }
  0x73   :  { %1794 = vmatpush3.bf16.msra.mxu0 %v2194_v14 }
  0x74   :  { %1795 = vmatprep.subr.bf16.mxu0 %v2110_v9 }
  0x77   :  { %1796 = vmatpush3.bf16.msra.mxu0 %v2207_v15 }
  0x78   :  { %1797 = vmatprep.subr.bf16.mxu0 %v2110_v9 }
  0x7b   :  { %1798 = vmatpush3.bf16.msra.mxu0 %v2213_v16 }
  0x7c   :  { %1799 = vmatprep.subr.bf16.mxu0 %v2110_v9 }
  0x7f   :  { %1800 = vmatpush3.bf16.msra.mxu0 %v2222_v17 }
  0x80   :  { %1801 = vmatprep.subr.bf16.mxu0 %v2110_v9 }
  0x83   :  { %1802 = vmatpush3.bf16.msra.mxu0 %v2234_v18 }
  0x84   :  { %1803 = vmatprep.subr.bf16.mxu0 %v2110_v9 }
  0x87   :  { %1804 = vmatpush3.bf16.msra.mxu0 %v2243_v19 }
  0x88   :  { %1805 = vmatprep.subr.bf16.mxu0 %v2110_v9 }
  0x8b   :  { %1806 = vmatpush3.bf16.msra.mxu0 %v2252_v20 }
  0x8c   :  { %1831 = vmatprep.subr.bf16.mxu0 %v2110_v9 }
  0xee   :  { %v1589_v22 = vpop.f32.mrf.mxu0 }
  0xf0   :  { %v1590_v23 = vpop.f32.mrf.mxu0  ;;  %v1611_v24 = vpop.f32.mrf.mxu1 }
  0xf1   :  { %v1591_v38 = vadd.f32 %v1590_v23, %v1589_v22 }
  0xf2   :  { %v1592_v25 = vpop.f32.mrf.mxu0  ;;  %v1612_v26 = vpop.f32.mrf.mxu1 }
  0xf3   :  { %v635_v40 = vadd.f32 %v1591_v38, %v1465_v39  ;;  %v1613_v41 = vadd.f32 %v1612_v26, %v1611_v24 }
  0xf4   :  { %v1593_v27 = vpop.f32.mrf.mxu0  ;;  %v1614_v28 = vpop.f32.mrf.mxu1 }
  0xf5   :  { %v675_v43 = vadd.f32 %v1613_v41, %v635_v40 }
  0xf6   :  { %v1615_v29 = vpop.f32.mrf.mxu1 }
 0x10e   :  { %v1633_v30 = vpop.f32.mrf.mxu0 }
 0x110   :  { %v1634_v31 = vpop.f32.mrf.mxu0  ;;  %v1655_v32 = vpop.f32.mrf.mxu1 }
 0x111   :  { %v1635_v42 = vadd.f32 %v1634_v31, %v1633_v30 }
 0x112   :  { %v1636_v33 = vpop.f32.mrf.mxu0  ;;  %v1656_v34 = vpop.f32.mrf.mxu1 }
 0x113   :  { %v715_v44 = vadd.f32 %v1635_v42, %v675_v43  ;;  %v1657_v45 = vadd.f32 %v1656_v34, %v1655_v32 }
 0x114   :  { %v1637_v35 = vpop.f32.mrf.mxu0  ;;  %v1658_v36 = vpop.f32.mrf.mxu1 }
 0x115   :  { %v2282_v46 = vadd.f32 %v1657_v45, %v715_v44 }
 0x116   :  { %v1659_v37 = vpop.f32.mrf.mxu1 }
 0x12e   :  { %v865_v47 = vpop.f32.mrf.mxu0 }
 0x12f   :  { %v866_v48 = vadd.f32 %v865_v47, %v2282_v46 }
 0x130   :  { %v1769_v49 = vpop.f32.mrf.mxu0 }
 0x131   :  { %v1547_v50 = vmul.f32 -1.442695, %v866_v48 }
 0x132   :  { %v868_v51 = vpop.f32.mrf.mxu0 }
 0x133   :  { %2053 = vpow2.f32 %v1547_v50 }
 0x134   :  { %v1770_v52 = vpop.f32.mrf.mxu0 }
 0x140   :  { %v2054_v53 = vpop.eup %2053 }
 0x141   :  { %v874_v54 = vadd.f32 1.0, %v2054_v53 }
 0x143   :  { %2055 = vrcp.f32 %v874_v54 }
 0x150   :  { %v2056_v56 = vpop.eup %2055 }
 0x151   :  { %v877_v57 = vmul.f32 %v2056_v56, %v2288_v55 }
 0x153   :  { %v879_v58 = vpack.c.bf16 %v877_v57, %v877_v57 }
 0x155   :  { %1788 = vmatmul.mubr.bf16.vlgmr.msra.gmra.mxu1 %v879_v58 }
 0x156   :  { %1812 = vmatpush3.bf16.msra.mxu1 %v2187_v13  ;;  %1827 = vmatprep.mubr.msk.bf16.mxu1 %vm2111_vm0, %v2110_v9 }
 0x157   :  { %1813 = vmatprep.subr.bf16.mxu1 %v2110_v9 }
 0x15a   :  { %1814 = vmatpush3.bf16.msra.mxu1 %v2194_v14 }
 0x15b   :  { %1815 = vmatprep.subr.bf16.mxu1 %v2110_v9 }
 0x15e   :  { %1816 = vmatpush3.bf16.msra.mxu1 %v2207_v15 }
 0x15f   :  { %1817 = vmatprep.subr.bf16.mxu1 %v2110_v9 }
 0x162   :  { %1818 = vmatpush3.bf16.msra.mxu1 %v2213_v16 }
 0x163   :  { %1819 = vmatprep.subr.bf16.mxu1 %v2110_v9 }
 0x166   :  { %1820 = vmatpush3.bf16.msra.mxu1 %v2222_v17 }
 0x167   :  { %1821 = vmatprep.subr.bf16.mxu1 %v2110_v9 }
 0x16a   :  { %1822 = vmatpush3.bf16.msra.mxu1 %v2234_v18 }
 0x16b   :  { %1823 = vmatprep.subr.bf16.mxu1 %v2110_v9 }
 0x16e   :  { %1824 = vmatpush3.bf16.msra.mxu1 %v2243_v19 }
 0x16f   :  { %1825 = vmatprep.subr.bf16.mxu1 %v2110_v9 }
 0x172   :  { %1826 = vmatpush3.bf16.msra.mxu1 %v2252_v20 }
 0x173   :  { %1851 = vmatprep.subr.bf16.mxu1 %v2110_v9 }
 0x215   :  { %v914_v59 = vpop.f32.mrf.mxu1 }
 0x216   :  { %v915_v60 = vadd.f32 %v914_v59, %v2282_v46 }
 0x217   :  { %v1789_v61 = vpop.f32.mrf.mxu1 }
 0x218   :  { %v1548_v62 = vmul.f32 -1.442695, %v915_v60 }
 0x219   :  { %v917_v63 = vpop.f32.mrf.mxu1 }
 0x21a   :  { %2057 = vpow2.f32 %v1548_v62 }
 0x21b   :  { %v1790_v0 = vpop.f32.mrf.mxu1 }
 0x227   :  { %v2058_v1 = vpop.eup %2057 }
 0x228   :  { %v923_v2 = vadd.f32 1.0, %v2058_v1 }
 0x22a   :  { %2059 = vrcp.f32 %v923_v2 }
 0x237   :  { %v2060_v3 = vpop.eup %2059 }
 0x238   :  { %v926_v4 = vsub.f32 %v2060_v3, %v877_v57 }
 0x23a   :  { %v927_v5 = vmul.f32 %v2288_v55, %v926_v4 }
 0x23c   :  { %v928_v6 = vadd.f32 %v927_v5, %v877_v57 }
 0x23e   :  { %v929_v7 = vpack.c.bf16 %v928_v6, %v928_v6 }
 0x240   :  { %1808 = vmatmul.mubr.bf16.vlgmr.msra.gmra.mxu0 %v929_v7 }
 0x241   :  { %1832 = vmatpush3.bf16.msra.mxu0 %v2187_v13  ;;  %1847 = vmatprep.mubr.msk.bf16.mxu0 %vm2111_vm0, %v2110_v9 }
 0x242   :  { %1833 = vmatprep.subr.bf16.mxu0 %v2110_v9 }
 0x245   :  { %1834 = vmatpush3.bf16.msra.mxu0 %v2194_v14 }
 0x246   :  { %1835 = vmatprep.subr.bf16.mxu0 %v2110_v9 }
 0x249   :  { %1836 = vmatpush3.bf16.msra.mxu0 %v2207_v15 }
 0x24a   :  { %1837 = vmatprep.subr.bf16.mxu0 %v2110_v9 }
 0x24d   :  { %1838 = vmatpush3.bf16.msra.mxu0 %v2213_v16 }
 0x24e   :  { %1839 = vmatprep.subr.bf16.mxu0 %v2110_v9 }
 0x251   :  { %1840 = vmatpush3.bf16.msra.mxu0 %v2222_v17 }
 0x252   :  { %1841 = vmatprep.subr.bf16.mxu0 %v2110_v9 }
 0x255   :  { %1842 = vmatpush3.bf16.msra.mxu0 %v2234_v18 }
 0x256   :  { %1843 = vmatprep.subr.bf16.mxu0 %v2110_v9 }
 0x259   :  { %1844 = vmatpush3.bf16.msra.mxu0 %v2243_v19 }
 0x25a   :  { %1845 = vmatprep.subr.bf16.mxu0 %v2110_v9 }
 0x25d   :  { %1846 = vmatpush3.bf16.msra.mxu0 %v2252_v20 }
 0x25e   :  { %1871 = vmatprep.subr.bf16.mxu0 %v2110_v9 }
 0x300   :  { %v964_v8 = vpop.f32.mrf.mxu0 }
 0x301   :  { %v965_v10 = vadd.f32 %v964_v8, %v2282_v46 }
 0x302   :  { %v1809_v11 = vpop.f32.mrf.mxu0 }
 0x303   :  { %v1549_v12 = vmul.f32 -1.442695, %v965_v10 }
 0x304   :  { %v967_v21 = vpop.f32.mrf.mxu0 }
 0x305   :  { %2061 = vpow2.f32 %v1549_v12  ;;  %v2037_v21 = vld [vmem:[%s2478_s5 + $0x38] sm:$0xff]  }
 0x306   :  { %v1810_v22 = vpop.f32.mrf.mxu0 }
 0x307   :  { %v2038_v22 = vld [vmem:[%s2478_s5 + $0x30] sm:$0xff]  }
 0x312   :  { %v2062_v23 = vpop.eup %2061 }
 0x313   :  { %v973_v24 = vadd.f32 1.0, %v2062_v23  ;;  %v2039_v23 = vld [vmem:[%s2478_s5 + $0x28] sm:$0xff]  }
 0x315   :  { %2063 = vrcp.f32 %v973_v24  ;;  %v2040_v24 = vld [vmem:[%s2478_s5 + $0x20] sm:$0xff]  }
 0x322   :  { %v2064_v25 = vpop.eup %2063 }
 0x323   :  { %v976_v26 = vsub.f32 %v2064_v25, %v928_v6  ;;  %v2041_v25 = vld [vmem:[%s2478_s5 + $0x18] sm:$0xff]  }
 0x325   :  { %v977_v27 = vmul.f32 %v2288_v55, %v976_v26  ;;  %v2042_v26 = vld [vmem:[%s2478_s5 + $0x10] sm:$0xff]  }
 0x327   :  { %v978_v28 = vadd.f32 %v977_v27, %v928_v6  ;;  %v2043_v27 = vld [vmem:[%s2478_s5 + $0x8] sm:$0xff]  }
 0x329   :  { %v979_v29 = vpack.c.bf16 %v978_v28, %v978_v28 }
 0x32b   :  { %1828 = vmatmul.mubr.bf16.vlgmr.msra.gmra.mxu1 %v979_v29  ;;  %v2045_v29 = vld [vmem:[%s2480_s7 + $0x38] sm:$0xff]  }
 0x32c   :  { %1852 = vmatpush3.bf16.msra.mxu1 %v2187_v13  ;;  %1867 = vmatprep.mubr.msk.bf16.mxu1 %vm2111_vm0, %v2110_v9 }
 0x32d   :  { %1853 = vmatprep.subr.bf16.mxu1 %v2110_v9 }
 0x330   :  { %1854 = vmatpush3.bf16.msra.mxu1 %v2194_v14 }
 0x331   :  { %1855 = vmatprep.subr.bf16.mxu1 %v2110_v9 }
 0x334   :  { %1856 = vmatpush3.bf16.msra.mxu1 %v2207_v15 }
 0x335   :  { %1857 = vmatprep.subr.bf16.mxu1 %v2110_v9 }
 0x338   :  { %1858 = vmatpush3.bf16.msra.mxu1 %v2213_v16 }
 0x339   :  { %1859 = vmatprep.subr.bf16.mxu1 %v2110_v9 }
 0x33c   :  { %1860 = vmatpush3.bf16.msra.mxu1 %v2222_v17 }
 0x33d   :  { %1861 = vmatprep.subr.bf16.mxu1 %v2110_v9 }
 0x340   :  { %1862 = vmatpush3.bf16.msra.mxu1 %v2234_v18 }
 0x341   :  { %1863 = vmatprep.subr.bf16.mxu1 %v2110_v9 }
 0x344   :  { %1864 = vmatpush3.bf16.msra.mxu1 %v2243_v19 }
 0x345   :  { %1865 = vmatprep.subr.bf16.mxu1 %v2110_v9 }
 0x348   :  { %1866 = vmatpush3.bf16.msra.mxu1 %v2252_v20 }
 0x349   :  { %1891 = vmatprep.subr.bf16.mxu1 %v2110_v9 }
 0x3eb   :  { %v1014_v30 = vpop.f32.mrf.mxu1 }
 0x3ec   :  { %v1015_v31 = vadd.f32 %v1014_v30, %v2282_v46  ;;  %v2046_v30 = vld [vmem:[%s2480_s7 + $0x30] sm:$0xff]  }
 0x3ed   :  { %v1829_v32 = vpop.f32.mrf.mxu1 }
 0x3ee   :  { %v1550_v33 = vmul.f32 -1.442695, %v1015_v31  ;;  %v2047_v31 = vld [vmem:[%s2480_s7 + $0x28] sm:$0xff]   ;;  %v2048_v32 = vld [vmem:[%s2480_s7 + $0x20] sm:$0xff]  }
 0x3ef   :  { %v1017_v34 = vpop.f32.mrf.mxu1 }
 0x3f0   :  { %2065 = vpow2.f32 %v1550_v33  ;;  %v2049_v33 = vld [vmem:[%s2480_s7 + $0x18] sm:$0xff]   ;;  %v2050_v34 = vld [vmem:[%s2480_s7 + $0x10] sm:$0xff]  }
 0x3f1   :  { %v1830_v35 = vpop.f32.mrf.mxu1 }
 0x3fd   :  { %v2066_v36 = vpop.eup %2065 }
 0x3fe   :  { %v1023_v37 = vadd.f32 1.0, %v2066_v36 }
 0x400   :  { %2067 = vrcp.f32 %v1023_v37 }
 0x40d   :  { %v2068_v38 = vpop.eup %2067 }
 0x40e   :  { %v1026_v39 = vsub.f32 %v2068_v38, %v978_v28 }
 0x410   :  { %v1027_v40 = vmul.f32 %v2288_v55, %v1026_v39 }
 0x412   :  { %v1028_v41 = vadd.f32 %v1027_v40, %v978_v28  ;;  %v2044_v28 = vld [vmem:[%s2478_s5] sm:$0xff]  }
 0x414   :  { %v1029_v42 = vpack.c.bf16 %v1028_v41, %v1028_v41 }
 0x416   :  { %1848 = vmatmul.mubr.bf16.vlgmr.msra.gmra.mxu0 %v1029_v42 }
 0x417   :  { %1872 = vmatpush3.bf16.msra.mxu0 %v2187_v13  ;;  %1887 = vmatprep.mubr.msk.bf16.mxu0 %vm2111_vm0, %v2110_v9 }
 0x418   :  { %1873 = vmatprep.subr.bf16.mxu0 %v2110_v9 }
 0x41b   :  { %1874 = vmatpush3.bf16.msra.mxu0 %v2194_v14 }
 0x41c   :  { %1875 = vmatprep.subr.bf16.mxu0 %v2110_v9 }
 0x41f   :  { %1876 = vmatpush3.bf16.msra.mxu0 %v2207_v15 }
 0x420   :  { %1877 = vmatprep.subr.bf16.mxu0 %v2110_v9 }
 0x423   :  { %1878 = vmatpush3.bf16.msra.mxu0 %v2213_v16 }
 0x424   :  { %1879 = vmatprep.subr.bf16.mxu0 %v2110_v9 }
 0x427   :  { %1880 = vmatpush3.bf16.msra.mxu0 %v2222_v17 }
 0x428   :  { %1881 = vmatprep.subr.bf16.mxu0 %v2110_v9 }
 0x42b   :  { %1882 = vmatpush3.bf16.msra.mxu0 %v2234_v18 }
 0x42c   :  { %1883 = vmatprep.subr.bf16.mxu0 %v2110_v9 }
 0x42f   :  { %1884 = vmatpush3.bf16.msra.mxu0 %v2243_v19 }
 0x430   :  { %1885 = vmatprep.subr.bf16.mxu0 %v2110_v9 }
 0x433   :  { %1886 = vmatpush3.bf16.msra.mxu0 %v2252_v20 }
 0x434   :  { %1911 = vmatprep.subr.bf16.mxu0 %v2110_v9 }
 0x4d6   :  { %v1064_v43 = vpop.f32.mrf.mxu0 }
 0x4d7   :  { %v1065_v44 = vadd.f32 %v1064_v43, %v2282_v46 }
 0x4d8   :  { %v1849_v45 = vpop.f32.mrf.mxu0 }
 0x4d9   :  { %v1551_v47 = vmul.f32 -1.442695, %v1065_v44 }
 0x4da   :  { %v1067_v48 = vpop.f32.mrf.mxu0 }
 0x4db   :  { %2069 = vpow2.f32 %v1551_v47 }
 0x4dc   :  { %v1850_v49 = vpop.f32.mrf.mxu0 }
 0x4dd   :  { %v2052_v49 = vld [vmem:[%s2480_s7] sm:$0xff]  }
 0x4e8   :  { %v2070_v50 = vpop.eup %2069 }
 0x4e9   :  { %v1073_v51 = vadd.f32 1.0, %v2070_v50 }
 0x4eb   :  { %2071 = vrcp.f32 %v1073_v51 }
 0x4f8   :  { %v2072_v52 = vpop.eup %2071 }
 0x4f9   :  { %v1076_v53 = vsub.f32 %v2072_v52, %v1028_v41 }
 0x4fb   :  { %v1077_v54 = vmul.f32 %v2288_v55, %v1076_v53 }
 0x4fd   :  { %v1078_v56 = vadd.f32 %v1077_v54, %v1028_v41 }
 0x4ff   :  { %v1079_v57 = vpack.c.bf16 %v1078_v56, %v1078_v56 }
 0x501   :  { %1868 = vmatmul.mubr.bf16.vlgmr.msra.gmra.mxu1 %v1079_v57 }
 0x502   :  { %1892 = vmatpush3.bf16.msra.mxu1 %v2187_v13  ;;  %1907 = vmatprep.mubr.msk.bf16.mxu1 %vm2111_vm0, %v2110_v9 }
 0x503   :  { %1893 = vmatprep.subr.bf16.mxu1 %v2110_v9 }
 0x506   :  { %1894 = vmatpush3.bf16.msra.mxu1 %v2194_v14 }
 0x507   :  { %1895 = vmatprep.subr.bf16.mxu1 %v2110_v9 }
 0x50a   :  { %1896 = vmatpush3.bf16.msra.mxu1 %v2207_v15 }
 0x50b   :  { %1897 = vmatprep.subr.bf16.mxu1 %v2110_v9 }
 0x50e   :  { %1898 = vmatpush3.bf16.msra.mxu1 %v2213_v16 }
 0x50f   :  { %1899 = vmatprep.subr.bf16.mxu1 %v2110_v9 }
 0x512   :  { %1900 = vmatpush3.bf16.msra.mxu1 %v2222_v17 }
 0x513   :  { %1901 = vmatprep.subr.bf16.mxu1 %v2110_v9 }
 0x516   :  { %1902 = vmatpush3.bf16.msra.mxu1 %v2234_v18 }
 0x517   :  { %1903 = vmatprep.subr.bf16.mxu1 %v2110_v9 }
 0x51a   :  { %1904 = vmatpush3.bf16.msra.mxu1 %v2243_v19 }
 0x51b   :  { %1905 = vmatprep.subr.bf16.mxu1 %v2110_v9 }
 0x51e   :  { %1906 = vmatpush3.bf16.msra.mxu1 %v2252_v20 }
 0x51f   :  { %1931 = vmatprep.subr.bf16.mxu1 %v2110_v9 }
 0x5c1   :  { %v1114_v13 = vpop.f32.mrf.mxu1 }
 0x5c2   :  { %v1115_v14 = vadd.f32 %v1114_v13, %v2282_v46 }
 0x5c3   :  { %v1869_v15 = vpop.f32.mrf.mxu1 }
 0x5c4   :  { %v1552_v16 = vmul.f32 -1.442695, %v1115_v14 }
 0x5c5   :  { %v1117_v17 = vpop.f32.mrf.mxu1 }
 0x5c6   :  { %2073 = vpow2.f32 %v1552_v16 }
 0x5c7   :  { %v1870_v58 = vpop.f32.mrf.mxu1 }
 0x5d3   :  { %v2074_v59 = vpop.eup %2073 }
 0x5d4   :  { %v1123_v18 = vadd.f32 1.0, %v2074_v59 }
 0x5d6   :  { %2075 = vrcp.f32 %v1123_v18 }
 0x5e3   :  { %v2076_v60 = vpop.eup %2075 }
 0x5e4   :  { %v1126_v61 = vsub.f32 %v2076_v60, %v1078_v56 }
 0x5e6   :  { %v1127_v19 = vmul.f32 %v2288_v55, %v1126_v61 }
 0x5e8   :  { %v1128_v62 = vadd.f32 %v1127_v19, %v1078_v56 }
 0x5ea   :  { %v1129_v63 = vpack.c.bf16 %v1128_v62, %v1128_v62 }
 0x5ec   :  { %1888 = vmatmul.mubr.bf16.vlgmr.msra.gmra.mxu0 %v1129_v63 }
 0x5ed   :  { %1927 = vmatprep.mubr.msk.bf16.mxu0 %vm2111_vm0, %v2110_v9  ;;  %1912 = vmatpush3.bf16.msra.mxu0 %v2037_v21 }
 0x5ee   :  { %1913 = vmatprep.subr.bf16.mxu0 %v2110_v9 }
 0x5f1   :  { %1914 = vmatpush3.bf16.msra.mxu0 %v2038_v22 }
 0x5f2   :  { %1915 = vmatprep.subr.bf16.mxu0 %v2110_v9 }
 0x5f5   :  { %1916 = vmatpush3.bf16.msra.mxu0 %v2039_v23 }
 0x5f6   :  { %1917 = vmatprep.subr.bf16.mxu0 %v2110_v9 }
 0x5f9   :  { %1918 = vmatpush3.bf16.msra.mxu0 %v2040_v24 }
 0x5fa   :  { %1919 = vmatprep.subr.bf16.mxu0 %v2110_v9 }
 0x5fd   :  { %1920 = vmatpush3.bf16.msra.mxu0 %v2041_v25 }
 0x5fe   :  { %1921 = vmatprep.subr.bf16.mxu0 %v2110_v9 }
 0x601   :  { %1922 = vmatpush3.bf16.msra.mxu0 %v2042_v26 }
 0x602   :  { %1923 = vmatprep.subr.bf16.mxu0 %v2110_v9 }
 0x605   :  { %1924 = vmatpush3.bf16.msra.mxu0 %v2043_v27 }
 0x606   :  { %1925 = vmatprep.subr.bf16.mxu0 %v2110_v9 }
 0x609   :  { %1926 = vmatpush3.bf16.msra.mxu0 %v2044_v28 }
 0x6ac   :  { %v1164_v20 = vpop.f32.mrf.mxu0 }
 0x6ad   :  { %v1165_v0 = vadd.f32 %v1164_v20, %v2282_v46 }
 0x6ae   :  { %v1889_v1 = vpop.f32.mrf.mxu0 }
 0x6af   :  { %v1553_v2 = vmul.f32 -1.442695, %v1165_v0 }
 0x6b0   :  { %v1167_v3 = vpop.f32.mrf.mxu0 }
 0x6b1   :  { %2077 = vpow2.f32 %v1553_v2 }
 0x6b2   :  { %v1890_v4 = vpop.f32.mrf.mxu0 }
 0x6be   :  { %v2078_v5 = vpop.eup %2077 }
 0x6bf   :  { %v1173_v6 = vadd.f32 1.0, %v2078_v5 }
 0x6c1   :  { %2079 = vrcp.f32 %v1173_v6 }
 0x6ce   :  { %v2080_v7 = vpop.eup %2079 }
 0x6cf   :  { %v1176_v8 = vsub.f32 %v2080_v7, %v1128_v62 }
 0x6d1   :  { %v1177_v10 = vmul.f32 %v2288_v55, %v1176_v8 }
 0x6d3   :  { %v1178_v11 = vadd.f32 %v1177_v10, %v1128_v62 }
 0x6d5   :  { %v1179_v12 = vpack.c.bf16 %v1178_v11, %v1178_v11 }
 0x6d7   :  { %1908 = vmatmul.mubr.bf16.vlgmr.msra.gmra.mxu1 %v1179_v12 }
 0x6d8   :  { %1947 = vmatprep.mubr.msk.bf16.mxu1 %vm2111_vm0, %v2110_v9  ;;  %1932 = vmatpush3.bf16.msra.mxu1 %v2045_v29 }
 0x6d9   :  { %1933 = vmatprep.subr.bf16.mxu1 %v2110_v9 }
 0x6dc   :  { %1934 = vmatpush3.bf16.msra.mxu1 %v2046_v30 }
 0x6dd   :  { %1935 = vmatprep.subr.bf16.mxu1 %v2110_v9 }
 0x6e0   :  { %1936 = vmatpush3.bf16.msra.mxu1 %v2047_v31 }
 0x6e1   :  { %1937 = vmatprep.subr.bf16.mxu1 %v2110_v9 }
 0x6e4   :  { %1938 = vmatpush3.bf16.msra.mxu1 %v2048_v32 }
 0x6e5   :  { %1939 = vmatprep.subr.bf16.mxu1 %v2110_v9 }
 0x6e8   :  { %1940 = vmatpush3.bf16.msra.mxu1 %v2049_v33 }
 0x6e9   :  { %1941 = vmatprep.subr.bf16.mxu1 %v2110_v9 }
 0x6ec   :  { %1942 = vmatpush3.bf16.msra.mxu1 %v2050_v34 }
 0x6ed   :  { %1943 = vmatprep.subr.bf16.mxu1 %v2110_v9 }
 0x797   :  { %v1214_v35 = vpop.f32.mrf.mxu1 }
 0x798   :  { %v1215_v36 = vadd.f32 %v1214_v35, %v2282_v46  ;;  %v2051_v46 = vld [vmem:[%s2480_s7 + $0x8] sm:$0xff]  }
 0x799   :  { %v1909_v37 = vpop.f32.mrf.mxu1  ;;  %1944 = vmatpush3.bf16.msra.mxu1 %v2051_v46 }
 0x79a   :  { %v1554_v38 = vmul.f32 -1.442695, %v1215_v36  ;;  %1945 = vmatprep.subr.bf16.mxu1 %v2110_v9  ;;  %v1564_v9 = vld [vmem:[%s2481_s8] ss:$0 sm:$0xff] }
 0x79b   :  { %v1217_v39 = vpop.f32.mrf.mxu1 }
 0x79c   :  { %2081 = vpow2.f32 %v1554_v38 }
 0x79d   :  { %v1910_v40 = vpop.f32.mrf.mxu1  ;;  %1946 = vmatpush3.bf16.msra.mxu1 %v2052_v49 }
 0x7a9   :  { %v2082_v41 = vpop.eup %2081 }
 0x7aa   :  { %v1223_v42 = vadd.f32 1.0, %v2082_v41 }
 0x7ac   :  { %2083 = vrcp.f32 %v1223_v42 }
 0x7b9   :  { %v2084_v43 = vpop.eup %2083 }
 0x7ba   :  { %v1226_v44 = vsub.f32 %v2084_v43, %v1178_v11 }
 0x7bc   :  { %v1227_v45 = vmul.f32 %v2288_v55, %v1226_v44  ;;  %v1555_v55 = vld [vmem:[%s2479_s6] ss:$0 sm:$0xff] }
 0x7be   :  { %v1228_v47 = vadd.f32 %v1227_v45, %v1178_v11 }
 0x7c0   :  { %1229 = vst [vmem:[%s2483_s10] sm:$0xff] %v1228_v47  ;;  %v1230_v48 = vpack.c.bf16 %v1228_v47, %v1228_v47 }
 0x7c2   :  { %1928 = vmatmul.mubr.bf16.vlgmr.msra.gmra.mxu0 %v1230_v48 }
 0x882   :  { %v1336_v50 = vpop.f32.mrf.mxu0 }
 0x883   :  { %v1337_v51 = vadd.f32 %v1555_v55, %v1336_v50 }
 0x884   :  { %v1929_v52 = vpop.f32.mrf.mxu0 }
 0x885   :  { %v1342_v53 = vmax.f32 %v1337_v51, 0.0 }
 0x886   :  { %v1339_v54 = vpop.f32.mrf.mxu0 }
 0x887   :  { %v1343_v56 = vpack.c.bf16 %v1342_v53, %v1342_v53 }
 0x888   :  { %v1930_v57 = vpop.f32.mrf.mxu0 }
 0x889   :  { %1948 = vmatmul.mubr.bf16.vlgmr.msra.gmra.mxu1 %v1343_v56 }
 0x949   :  { %v1449_v13 = vpop.f32.mrf.mxu1 }
 0x94a   :  { %v1450_v14 = vadd.f32 %v1564_v9, %v1449_v13 }
 0x94b   :  { %v1949_v15 = vpop.f32.mrf.mxu1 }
 0x94c   :  { %1455 = vst [vmem:[%s2482_s9] sm:$0xff] %v1450_v14 }
 0x94d   :  { %v1452_v16 = vpop.f32.mrf.mxu1 }
 0x94f   :  { %v1950_v17 = vpop.f32.mrf.mxu1 }
 0x950   :  { %1464 = vsyncpa [#allocation3], 1 }

</bundles_post_ra>
